<compile_context>
chip_gen: v6e
topology: v6e:2x2x1
jax: 0.10.0
libtpu: 0.0.40
codegen_flags: <defaults>
</compile_context>

<pallas_src>
import jax
import jax.numpy as jnp
from jax.experimental import pallas as pl
from jax.experimental.pallas import tpu as pltpu


def _round_up(x, m):
    return ((x + m - 1) // m) * m


def _mlp_kernel(x_ref, w1_ref, b1_ref, w2_ref, b2_ref, w3_ref, b3_ref, o_ref):
    # x_ref : (tm, D_in) f32         w1: (D_in, H) bf16   b1: (1, H) f32
    # w2    : (H, H)     bf16        b2: (1, H)    f32
    # w3    : (H, D_out) bf16        b3: (1, D_out) f32
    # Cast activations to bf16 on the VPU (free filler under the x DMA);
    # every dot accumulates in f32 on the MXU.
    x = x_ref[...].astype(jnp.bfloat16)

    h1 = jnp.dot(x, w1_ref[...], preferred_element_type=jnp.float32) + b1_ref[...]
    h1 = jnp.maximum(h1, 0.0).astype(jnp.bfloat16)

    h2 = jnp.dot(h1, w2_ref[...], preferred_element_type=jnp.float32) + b2_ref[...]
    h2 = jnp.maximum(h2, 0.0).astype(jnp.bfloat16)

    out = jnp.dot(h2, w3_ref[...], preferred_element_type=jnp.float32) + b3_ref[...]
    o_ref[...] = out.astype(o_ref.dtype)


def prepare_params(params):
    """One-time bf16 cast of the weights (hoisted out of the forward path).

    Call once and reuse the result across forward calls so the per-call
    standalone HBM convert ops disappear.
    """
    w1, b1, w2, b2, w3, b3 = params
    return (
        w1.astype(jnp.bfloat16), b1.astype(jnp.float32),
        w2.astype(jnp.bfloat16), b2.astype(jnp.float32),
        w3.astype(jnp.bfloat16), b3.astype(jnp.float32),
    )


def mlp_forward(x_nchw, prepared_params):
    """x_nchw: (B, C, H, H) float32.  prepared_params from prepare_params().

    Returns (B, C, H, H) float32.
    """
    w1b, b1, w2b, b2, w3b, b3 = prepared_params
    B, C, H, W = x_nchw.shape
    d_in = C * H * W
    hidden = w1b.shape[1]
    d_out = w3b.shape[1]
    assert d_out == d_in, "reshape in forward() requires output_size == C*H*H"

    x_flat = x_nchw.reshape(B, d_in)

    # Batch padding to a multiple of 16 (full bf16 sublane packing), batch
    # tile up to 512 rows.  When the batch is big enough, cap the tile so the
    # grid has >= 2 steps (lets the "parallel" axis shard across v7x's 2 TCs).
    b16 = _round_up(B, 16)
    tm = min(512, b16)
    if b16 >= 32:
        tm = min(tm, _round_up((b16 + 1) // 2, 16))
    b_pad = _round_up(b16, tm)
    if b_pad != B:
        x_flat = jnp.pad(x_flat, ((0, b_pad - B), (0, 0)))

    grid = (b_pad // tm,)

    def resident(shape):
        # Weights / biases: same block every grid step -> stay VMEM-resident.
        return pl.BlockSpec(shape, lambda i, _n=len(shape): (0,) * _n)

    flops = 2 * b_pad * (d_in * hidden + hidden * hidden + hidden * d_out)
    bytes_accessed = (
        b_pad * d_in * 4                              # f32 x read
        + (w1b.size + w2b.size + w3b.size) * 2        # bf16 weights
        + (b1.size + b2.size + b3.size) * 4           # f32 biases
        + b_pad * d_out * 4                           # f32 output write
    )
    cost = pl.CostEstimate(
        flops=flops, transcendentals=0, bytes_accessed=bytes_accessed
    )

    out_flat = pl.pallas_call(
        _mlp_kernel,
        out_shape=jax.ShapeDtypeStruct((b_pad, d_out), jnp.float32),
        grid_spec=pltpu.PrefetchScalarGridSpec(
            num_scalar_prefetch=0,
            grid=grid,
            in_specs=[
                pl.BlockSpec((tm, d_in), lambda i: (i, 0)),
                resident(w1b.shape), resident(b1.shape),
                resident(w2b.shape), resident(b2.shape),
                resident(w3b.shape), resident(b3.shape),
            ],
            out_specs=pl.BlockSpec((tm, d_out), lambda i: (i, 0)),
        ),
        compiler_params=pltpu.CompilerParams(
            dimension_semantics=("parallel",),
            vmem_limit_bytes=16 * 1024 * 1024,
        ),
        cost_estimate=cost,
    )(x_flat, w1b, b1, w2b, b2, w3b, b3)

    return out_flat[:B].reshape(B, C, H, W)


def init_params(key, input_size, hidden_size, output_size):
    """Deterministic init; weights stored as (in, out) = PyTorch W.T."""
    ks = jax.random.split(key, 6)

    def lin(kw, kb, fan_in, fan_out):
        bound = 1.0 / jnp.sqrt(fan_in)
        w = jax.random.uniform(kw, (fan_in, fan_out), jnp.float32, -bound, bound)
        b = jax.random.uniform(kb, (1, fan_out), jnp.float32, -bound, bound)
        return w, b

    w1, b1 = lin(ks[0], ks[1], input_size, hidden_size)
    w2, b2 = lin(ks[2], ks[3], hidden_size, hidden_size)
    w3, b3 = lin(ks[4], ks[5], hidden_size, output_size)
    return (w1, b1, w2, b2, w3, b3)


if __name__ == "__main__":
    key = jax.random.PRNGKey(0)
    k_x, k_p = jax.random.split(key)

    # Shapes implied by forward(): x is (B, C, H, H); the final reshape
    # forces output_size == input_size == C*H*H.
    B, C, H = 2, 4, 16
    input_size = C * H * H        # 1024
    hidden_size = 32              # TODO(synk): hidden=32 wastes 96/128 MXU cols & VPU lanes; pad to 128 if this ever becomes compute-bound.
    output_size = input_size      # 1024

    x = jax.random.normal(k_x, (B, C, H, H), jnp.float32)
    params = init_params(k_p, input_size, hidden_size, output_size)
    prepared = prepare_params(params)   # bf16 weight cast hoisted / cached once

    out = jax.block_until_ready(mlp_forward(x, prepared))
    assert out.shape == (B, C, H, H)

    # Reference in plain JAX using the same bf16 weights / bf16 activations /
    # f32 accumulation the kernel uses.
    w1, b1, w2, b2, w3, b3 = params
    xf = x.reshape(B, -1).astype(jnp.bfloat16)
    w1b, w2b, w3b = (w.astype(jnp.bfloat16) for w in (w1, w2, w3))
    h = jnp.maximum(jnp.dot(xf, w1b, preferred_element_type=jnp.float32) + b1, 0.0)
    h = jnp.maximum(
        jnp.dot(h.astype(jnp.bfloat16), w2b, preferred_element_type=jnp.float32) + b2,
        0.0,
    )
    ref = (
        jnp.dot(h.astype(jnp.bfloat16), w3b, preferred_element_type=jnp.float32) + b3
    ).reshape(B, C, H, H)
    assert jnp.allclose(out, ref, atol=2e-2, rtol=2e-2)

    print("KERNEL_OK")
</pallas_src>

<mosaic_0001>
module attributes {stable_mosaic.version = 11 : i64} {
  func.func @_mlp_kernel(%arg0: i32, %arg1: memref<16x1024xf32, #tpu.memory_space<vmem>>, %arg2: memref<1024x32xbf16, #tpu.memory_space<vmem>>, %arg3: memref<1x32xf32, #tpu.memory_space<vmem>>, %arg4: memref<32x32xbf16, #tpu.memory_space<vmem>>, %arg5: memref<1x32xf32, #tpu.memory_space<vmem>>, %arg6: memref<32x1024xbf16, #tpu.memory_space<vmem>>, %arg7: memref<1x1024xf32, #tpu.memory_space<vmem>>, %arg8: memref<16x1024xf32, #tpu.memory_space<vmem>>) attributes {dimension_semantics = [#tpu.dimension_semantics<parallel>], iteration_bounds = array<i64: 1>, scalar_prefetch = 0 : i64, scratch_operands = 0 : i64, tpu.core_type = #tpu.core_type<tc>, window_params = [{transform_indices = @transform_0, window_bounds = array<i64: 16, 1024>}, {pipeline_mode = #tpu.pipeline_mode<synchronous>, transform_indices = @transform_1, window_bounds = array<i64: 1024, 32>}, {pipeline_mode = #tpu.pipeline_mode<synchronous>, transform_indices = @transform_2, window_bounds = array<i64: 1, 32>}, {pipeline_mode = #tpu.pipeline_mode<synchronous>, transform_indices = @transform_3, window_bounds = array<i64: 32, 32>}, {pipeline_mode = #tpu.pipeline_mode<synchronous>, transform_indices = @transform_4, window_bounds = array<i64: 1, 32>}, {pipeline_mode = #tpu.pipeline_mode<synchronous>, transform_indices = @transform_5, window_bounds = array<i64: 32, 1024>}, {pipeline_mode = #tpu.pipeline_mode<synchronous>, transform_indices = @transform_6, window_bounds = array<i64: 1, 1024>}, {transform_indices = @transform_7, window_bounds = array<i64: 16, 1024>}]} {
    %c0 = arith.constant 0 : index
    %c0_0 = arith.constant 0 : index
    %0 = vector.load %arg1[%c0, %c0_0] : memref<16x1024xf32, #tpu.memory_space<vmem>>, vector<16x1024xf32>
    %1 = arith.truncf %0 : vector<16x1024xf32> to vector<16x1024xbf16>
    %c0_1 = arith.constant 0 : index
    %c0_2 = arith.constant 0 : index
    %2 = vector.load %arg2[%c0_1, %c0_2] : memref<1024x32xbf16, #tpu.memory_space<vmem>>, vector<1024x32xbf16>
    %cst = arith.constant dense<0.000000e+00> : vector<16x32xf32>
    %3 = tpu.matmul %1, %2, %cst {dimension_numbers = #tpu.dot_dimension_numbers<[1], [0], [0], [1], [0, 0, 1, 1], [], []>} : vector<16x1024xbf16>, vector<1024x32xbf16>, vector<16x32xf32> -> vector<16x32xf32>
    %c0_3 = arith.constant 0 : index
    %c0_4 = arith.constant 0 : index
    %4 = vector.load %arg3[%c0_3, %c0_4] : memref<1x32xf32, #tpu.memory_space<vmem>>, vector<1x32xf32>
    %5 = vector.broadcast %4 : vector<1x32xf32> to vector<16x32xf32>
    %6 = arith.addf %3, %5 : vector<16x32xf32>
    %cst_5 = arith.constant 0.000000e+00 : f32
    %7 = vector.broadcast %cst_5 : f32 to vector<16x32xf32>
    %8 = arith.maximumf %6, %7 : vector<16x32xf32>
    %9 = arith.truncf %8 : vector<16x32xf32> to vector<16x32xbf16>
    %c0_6 = arith.constant 0 : index
    %c0_7 = arith.constant 0 : index
    %10 = vector.load %arg4[%c0_6, %c0_7] : memref<32x32xbf16, #tpu.memory_space<vmem>>, vector<32x32xbf16>
    %cst_8 = arith.constant dense<0.000000e+00> : vector<16x32xf32>
    %11 = tpu.matmul %9, %10, %cst_8 {dimension_numbers = #tpu.dot_dimension_numbers<[1], [0], [0], [1], [0, 0, 1, 1], [], []>} : vector<16x32xbf16>, vector<32x32xbf16>, vector<16x32xf32> -> vector<16x32xf32>
    %c0_9 = arith.constant 0 : index
    %c0_10 = arith.constant 0 : index
    %12 = vector.load %arg5[%c0_9, %c0_10] : memref<1x32xf32, #tpu.memory_space<vmem>>, vector<1x32xf32>
    %13 = vector.broadcast %12 : vector<1x32xf32> to vector<16x32xf32>
    %14 = arith.addf %11, %13 : vector<16x32xf32>
    %cst_11 = arith.constant 0.000000e+00 : f32
    %15 = vector.broadcast %cst_11 : f32 to vector<16x32xf32>
    %16 = arith.maximumf %14, %15 : vector<16x32xf32>
    %17 = arith.truncf %16 : vector<16x32xf32> to vector<16x32xbf16>
    %c0_12 = arith.constant 0 : index
    %c0_13 = arith.constant 0 : index
    %18 = vector.load %arg6[%c0_12, %c0_13] : memref<32x1024xbf16, #tpu.memory_space<vmem>>, vector<32x1024xbf16>
    %cst_14 = arith.constant dense<0.000000e+00> : vector<16x1024xf32>
    %19 = tpu.matmul %17, %18, %cst_14 {dimension_numbers = #tpu.dot_dimension_numbers<[1], [0], [0], [1], [0, 0, 1, 1], [], []>} : vector<16x32xbf16>, vector<32x1024xbf16>, vector<16x1024xf32> -> vector<16x1024xf32>
    %c0_15 = arith.constant 0 : index
    %c0_16 = arith.constant 0 : index
    %20 = vector.load %arg7[%c0_15, %c0_16] : memref<1x1024xf32, #tpu.memory_space<vmem>>, vector<1x1024xf32>
    %21 = vector.broadcast %20 : vector<1x1024xf32> to vector<16x1024xf32>
    %22 = arith.addf %19, %21 : vector<16x1024xf32>
    %c0_17 = arith.constant 0 : index
    %c0_18 = arith.constant 0 : index
    %23 = vector.load %arg8[%c0_17, %c0_18] : memref<16x1024xf32, #tpu.memory_space<vmem>>, vector<16x1024xf32>
    tpu.vector_store %arg8[%c0_17, %c0_18], %22 {strides = array<i32>} : memref<16x1024xf32, #tpu.memory_space<vmem>>, vector<16x1024xf32>,
    return
  }
  func.func @transform_0(%arg0: i32) -> (i32, i32) {
    %c0_i32 = arith.constant 0 : i32
    %c0_i32_0 = arith.constant 0 : i32
    return %arg0, %c0_i32 : i32, i32
  }
  func.func @transform_1(%arg0: i32) -> (i32, i32) {
    %c0_i32 = arith.constant 0 : i32
    %c0_i32_0 = arith.constant 0 : i32
    %c0_i32_1 = arith.constant 0 : i32
    return %c0_i32, %c0_i32_0 : i32, i32
  }
  func.func @transform_2(%arg0: i32) -> (i32, i32) {
    %c0_i32 = arith.constant 0 : i32
    %c0_i32_0 = arith.constant 0 : i32
    %c0_i32_1 = arith.constant 0 : i32
    return %c0_i32, %c0_i32_0 : i32, i32
  }
  func.func @transform_3(%arg0: i32) -> (i32, i32) {
    %c0_i32 = arith.constant 0 : i32
    %c0_i32_0 = arith.constant 0 : i32
    %c0_i32_1 = arith.constant 0 : i32
    return %c0_i32, %c0_i32_0 : i32, i32
  }
  func.func @transform_4(%arg0: i32) -> (i32, i32) {
    %c0_i32 = arith.constant 0 : i32
    %c0_i32_0 = arith.constant 0 : i32
    %c0_i32_1 = arith.constant 0 : i32
    return %c0_i32, %c0_i32_0 : i32, i32
  }
  func.func @transform_5(%arg0: i32) -> (i32, i32) {
    %c0_i32 = arith.constant 0 : i32
    %c0_i32_0 = arith.constant 0 : i32
    %c0_i32_1 = arith.constant 0 : i32
    return %c0_i32, %c0_i32_0 : i32, i32
  }
  func.func @transform_6(%arg0: i32) -> (i32, i32) {
    %c0_i32 = arith.constant 0 : i32
    %c0_i32_0 = arith.constant 0 : i32
    %c0_i32_1 = arith.constant 0 : i32
    return %c0_i32, %c0_i32_0 : i32, i32
  }
  func.func @transform_7(%arg0: i32) -> (i32, i32) {
    %c0_i32 = arith.constant 0 : i32
    %c0_i32_0 = arith.constant 0 : i32
    return %arg0, %c0_i32 : i32, i32
  }
}

</mosaic_0001>

<bundles_post_ra>
// kernel: tpu_custom_call.1
= control target key start
LH: loop header
LB: loop body
LE: loop exit
PB: predicated region body
PF: predicated region fallthrough
CT: control target
= control target key end

     0   :  { %s1793_s0 = inlined_call_operand.vmem [shape: f32[16,1024], index: 0, kind: input, shape index: {}]   ;;  %s1794_s1 = inlined_call_operand.vmem [shape: bf16[1024,32], index: 1, kind: input, shape index: {}]   ;;  %s1795_s2 = inlined_call_operand.vmem [shape: f32[1,32], index: 2, kind: input, shape index: {}]   ;;  %s1796_s3 = inlined_call_operand.vmem [shape: bf16[32,32], index: 3, kind: input, shape index: {}]   ;;  %s1797_s4 = inlined_call_operand.vmem [shape: f32[1,32], index: 4, kind: input, shape index: {}]   ;;  %s1798_s5 = inlined_call_operand.vmem [shape: bf16[32,1024], index: 5, kind: input, shape index: {}]   ;;  %s1799_s6 = inlined_call_operand.vmem [shape: f32[1,1024], index: 6, kind: input, shape index: {}]   ;;  %s1800_s7 = inlined_call_operand.hbm [shape: f32[16,1024], index: 7, kind: output, shape index: {}]  }
   0x1   :  { %v1348_v0 = vld [vmem:[%s1794_s1 + $0x78] sm:$0xff]   ;;  %v1352_v4 = vld [vmem:[%s1794_s1 + $0x70] sm:$0xff]   ;;  %v1356_v8 = vld [vmem:[%s1794_s1 + $0x68] sm:$0xff]  }
   0x2   :  { %v1349_v1 = vld [vmem:[%s1794_s1 + $0xf8] sm:$0xff]   ;;  %1243 = vmatprep.subr.bf16.mxu0 %v1348_v0  ;;  %v1353_v5 = vld [vmem:[%s1794_s1 + $0xf0] sm:$0xff]   ;;  %v1357_v9 = vld [vmem:[%s1794_s1 + $0xe8] sm:$0xff]  }
   0x3   :  { %v1350_v2 = vld [vmem:[%s1794_s1 + $0x38] sm:$0xff]   ;;  %1265 = vmatprep.subr.bf16.mxu1 %v1349_v1  ;;  %v1354_v6 = vld [vmem:[%s1794_s1 + $0x30] sm:$0xff]   ;;  %v1358_v10 = vld [vmem:[%s1794_s1 + $0x28] sm:$0xff]  }
   0x4   :  { %v1351_v3 = vld [vmem:[%s1794_s1 + $0xb8] sm:$0xff]   ;;  %1244 = vmatpush3.bf16.msra.mxu0 %v1350_v2  ;;  %v1355_v7 = vld [vmem:[%s1794_s1 + $0xb0] sm:$0xff]   ;;  %v1359_v11 = vld [vmem:[%s1794_s1 + $0xa8] sm:$0xff]  }
   0x5   :  { %1266 = vmatpush3.bf16.msra.mxu1 %v1351_v3  ;;  %1245 = vmatprep.subr.bf16.mxu0 %v1352_v4  ;;  %v1360_v12 = vld [vmem:[%s1794_s1 + $0x60] sm:$0xff]   ;;  %v1364_v16 = vld [vmem:[%s1794_s1 + $0x58] sm:$0xff]   ;;  %v1368_v20 = vld [vmem:[%s1794_s1 + $0x50] sm:$0xff]  }
   0x6   :  { %1267 = vmatprep.subr.bf16.mxu1 %v1353_v5  ;;  %v1361_v13 = vld [vmem:[%s1794_s1 + $0xe0] sm:$0xff]   ;;  %v1365_v17 = vld [vmem:[%s1794_s1 + $0xd8] sm:$0xff]   ;;  %v1369_v21 = vld [vmem:[%s1794_s1 + $0xd0] sm:$0xff]  }
   0x7   :  { %v1362_v14 = vld [vmem:[%s1794_s1 + $0x20] sm:$0xff]   ;;  %v1366_v18 = vld [vmem:[%s1794_s1 + $0x18] sm:$0xff]   ;;  %v1370_v22 = vld [vmem:[%s1794_s1 + $0x10] sm:$0xff]  }
   0x8   :  { %1246 = vmatpush3.bf16.msra.mxu0 %v1354_v6  ;;  %v1363_v15 = vld [vmem:[%s1794_s1 + $0xa0] sm:$0xff]   ;;  %v1367_v19 = vld [vmem:[%s1794_s1 + $0x98] sm:$0xff]   ;;  %v1371_v23 = vld [vmem:[%s1794_s1 + $0x90] sm:$0xff]  }
   0x9   :  { %1268 = vmatpush3.bf16.msra.mxu1 %v1355_v7  ;;  %1247 = vmatprep.subr.bf16.mxu0 %v1356_v8  ;;  %v1372_v24 = vld [vmem:[%s1794_s1 + $0x48] sm:$0xff]   ;;  %v1376_v28 = vld [vmem:[%s1794_s1 + $0x40] sm:$0xff]   ;;  %v31_v34 = vld [vmem:[%s1793_s0 + $0x18] sm:$0xff] }
   0xa   :  { %1269 = vmatprep.subr.bf16.mxu1 %v1357_v9  ;;  %v1373_v25 = vld [vmem:[%s1794_s1 + $0xc8] sm:$0xff]   ;;  %v1377_v29 = vld [vmem:[%s1794_s1 + $0xc0] sm:$0xff]   ;;  %v39_v36 = vld [vmem:[%s1793_s0 + $0x58] sm:$0xff] }
   0xb   :  { %v1374_v26 = vld [vmem:[%s1794_s1 + $0x8] sm:$0xff]   ;;  %v1378_v30 = vld [vmem:[%s1794_s1] sm:$0xff]   ;;  %v47_v39 = vpack.c.bf16 %v39_v36, %v31_v34  ;;  %v30_v41 = vld [vmem:[%s1793_s0 + $0x10] sm:$0xff] }
   0xc   :  { %1248 = vmatpush3.bf16.msra.mxu0 %v1358_v10  ;;  %v1375_v27 = vld [vmem:[%s1794_s1 + $0x88] sm:$0xff]   ;;  %v1379_v31 = vld [vmem:[%s1794_s1 + $0x80] sm:$0xff]   ;;  %v38_v42 = vld [vmem:[%s1793_s0 + $0x50] sm:$0xff] }
   0xd   :  { %1270 = vmatpush3.bf16.msra.mxu1 %v1359_v11  ;;  %1249 = vmatprep.subr.bf16.mxu0 %v1360_v12  ;;  %v29_v32 = vld [vmem:[%s1793_s0 + $0x8] sm:$0xff]  ;;  %v28_v37 = vld [vmem:[%s1793_s0] sm:$0xff]  ;;  %v46_v43 = vpack.c.bf16 %v38_v42, %v30_v41  ;;  %v1380_v44 = vld [vmem:[%s1794_s1 + $0x178] sm:$0xff]  }
   0xe   :  { %1271 = vmatprep.subr.bf16.mxu1 %v1361_v13  ;;  %v37_v33 = vld [vmem:[%s1793_s0 + $0x48] sm:$0xff]  ;;  %v36_v38 = vld [vmem:[%s1793_s0 + $0x40] sm:$0xff]  ;;  %644 = vmatprep.mubr.bf16.mxu1 %v47_v39  ;;  %v1381_v45 = vld [vmem:[%s1794_s1 + $0x1f8] sm:$0xff]  }
   0xf   :  { %v45_v35 = vpack.c.bf16 %v37_v33, %v29_v32  ;;  %v44_v40 = vpack.c.bf16 %v36_v38, %v28_v37  ;;  %v1382_v46 = vld [vmem:[%s1794_s1 + $0x138] sm:$0xff]   ;;  %v1384_v48 = vld [vmem:[%s1794_s1 + $0x170] sm:$0xff]   ;;  %v1388_v52 = vld [vmem:[%s1794_s1 + $0x168] sm:$0xff]  }
  0x10   :  { %1250 = vmatpush3.bf16.msra.mxu0 %v1362_v14  ;;  %v1383_v47 = vld [vmem:[%s1794_s1 + $0x1b8] sm:$0xff]   ;;  %v1385_v49 = vld [vmem:[%s1794_s1 + $0x1f0] sm:$0xff]   ;;  %v1389_v53 = vld [vmem:[%s1794_s1 + $0x1e8] sm:$0xff]  }
  0x11   :  { %1272 = vmatpush3.bf16.msra.mxu1 %v1363_v15  ;;  %1251 = vmatprep.subr.bf16.mxu0 %v1364_v16  ;;  %v1386_v50 = vld [vmem:[%s1794_s1 + $0x130] sm:$0xff]   ;;  %v1390_v54 = vld [vmem:[%s1794_s1 + $0x128] sm:$0xff]   ;;  %v1392_v56 = vld [vmem:[%s1794_s1 + $0x160] sm:$0xff]  }
  0x12   :  { %1273 = vmatprep.subr.bf16.mxu1 %v1365_v17  ;;  %603 = vmatprep.mubr.bf16.mxu0 %v45_v35  ;;  %v1387_v51 = vld [vmem:[%s1794_s1 + $0x1b0] sm:$0xff]   ;;  %v1391_v55 = vld [vmem:[%s1794_s1 + $0x1a8] sm:$0xff]   ;;  %v1393_v57 = vld [vmem:[%s1794_s1 + $0x1e0] sm:$0xff]  }
  0x13   :  { %v1394_v58 = vld [vmem:[%s1794_s1 + $0x120] sm:$0xff]   ;;  %v1396_v60 = vld [vmem:[%s1794_s1 + $0x158] sm:$0xff]   ;;  %v1400_v0 = vld [vmem:[%s1794_s1 + $0x150] sm:$0xff]  }
  0x14   :  { %1252 = vmatpush3.bf16.msra.mxu0 %v1366_v18  ;;  %v1395_v59 = vld [vmem:[%s1794_s1 + $0x1a0] sm:$0xff]   ;;  %v1397_v61 = vld [vmem:[%s1794_s1 + $0x1d8] sm:$0xff]   ;;  %v1401_v1 = vld [vmem:[%s1794_s1 + $0x1d0] sm:$0xff]  }
  0x15   :  { %1274 = vmatpush3.bf16.msra.mxu1 %v1367_v19  ;;  %1253 = vmatprep.subr.bf16.mxu0 %v1368_v20  ;;  %v1398_v62 = vld [vmem:[%s1794_s1 + $0x118] sm:$0xff]   ;;  %v1402_v2 = vld [vmem:[%s1794_s1 + $0x110] sm:$0xff]   ;;  %v1404_v4 = vld [vmem:[%s1794_s1 + $0x148] sm:$0xff]  }
  0x16   :  { %1275 = vmatprep.subr.bf16.mxu1 %v1369_v21  ;;  %v1399_v63 = vld [vmem:[%s1794_s1 + $0x198] sm:$0xff]   ;;  %v1403_v3 = vld [vmem:[%s1794_s1 + $0x190] sm:$0xff]   ;;  %v1405_v5 = vld [vmem:[%s1794_s1 + $0x1c8] sm:$0xff]  }
  0x17   :  { %v1406_v6 = vld [vmem:[%s1794_s1 + $0x108] sm:$0xff]   ;;  %v1408_v8 = vld [vmem:[%s1794_s1 + $0x140] sm:$0xff]   ;;  %v35_v14 = vld [vmem:[%s1793_s0 + $0x38] sm:$0xff] }
  0x18   :  { %1254 = vmatpush3.bf16.msra.mxu0 %v1370_v22  ;;  %v1407_v7 = vld [vmem:[%s1794_s1 + $0x188] sm:$0xff]   ;;  %v1409_v9 = vld [vmem:[%s1794_s1 + $0x1c0] sm:$0xff]   ;;  %v43_v15 = vld [vmem:[%s1793_s0 + $0x78] sm:$0xff] }
  0x19   :  { %1276 = vmatpush3.bf16.msra.mxu1 %v1371_v23  ;;  %1255 = vmatprep.subr.bf16.mxu0 %v1372_v24  ;;  %v1410_v10 = vld [vmem:[%s1794_s1 + $0x100] sm:$0xff]   ;;  %v33_v12 = vld [vmem:[%s1793_s0 + $0x28] sm:$0xff]  ;;  %v51_v17 = vpack.c.bf16 %v43_v15, %v35_v14  ;;  %v34_v20 = vld [vmem:[%s1793_s0 + $0x30] sm:$0xff] }
  0x1a   :  { %1277 = vmatprep.subr.bf16.mxu1 %v1373_v25  ;;  %v1411_v11 = vld [vmem:[%s1794_s1 + $0x180] sm:$0xff]   ;;  %v41_v13 = vld [vmem:[%s1793_s0 + $0x68] sm:$0xff]  ;;  %v42_v22 = vld [vmem:[%s1793_s0 + $0x70] sm:$0xff] }
  0x1b   :  { %v49_v16 = vpack.c.bf16 %v41_v13, %v33_v12  ;;  %v32_v18 = vld [vmem:[%s1793_s0 + $0x20] sm:$0xff]  ;;  %v50_v23 = vpack.c.bf16 %v42_v22, %v34_v20 }
  0x1c   :  { %1256 = vmatpush3.bf16.msra.mxu0 %v1374_v26  ;;  %v40_v19 = vld [vmem:[%s1793_s0 + $0x60] sm:$0xff] }
  0x1d   :  { %1278 = vmatpush3.bf16.msra.mxu1 %v1375_v27  ;;  %1257 = vmatprep.subr.bf16.mxu0 %v1376_v28  ;;  %v48_v21 = vpack.c.bf16 %v40_v19, %v32_v18 }
  0x1e   :  { %1279 = vmatprep.subr.bf16.mxu1 %v1377_v29 }
  0x20   :  { %1258 = vmatpush3.bf16.msra.mxu0 %v1378_v30 }
  0x21   :  { %1280 = vmatpush3.bf16.msra.mxu1 %v1379_v31  ;;  %1287 = vmatprep.subr.bf16.mxu0 %v1380_v44 }
  0x22   :  { %1309 = vmatprep.subr.bf16.mxu1 %v1381_v45 }
  0x23   :  { %604 = vmatmul.mubr.bf16.vlgmr.msra.gmra.mxu0 %v44_v40 }
  0x24   :  { %645 = vmatmul.mubr.bf16.vlgmr.msra.gmra.mxu1 %v46_v43  ;;  %1288 = vmatpush3.bf16.msra.mxu0 %v1382_v46 }
  0x25   :  { %1310 = vmatpush3.bf16.msra.mxu1 %v1383_v47  ;;  %1289 = vmatprep.subr.bf16.mxu0 %v1384_v48 }
  0x26   :  { %1311 = vmatprep.subr.bf16.mxu1 %v1385_v49  ;;  %685 = vmatprep.mubr.bf16.mxu0 %v49_v16 }
  0x27   :  { %726 = vmatprep.mubr.bf16.mxu1 %v51_v17 }
  0x28   :  { %1290 = vmatpush3.bf16.msra.mxu0 %v1386_v50 }
  0x29   :  { %1312 = vmatpush3.bf16.msra.mxu1 %v1387_v51  ;;  %1291 = vmatprep.subr.bf16.mxu0 %v1388_v52 }
  0x2a   :  { %1313 = vmatprep.subr.bf16.mxu1 %v1389_v53 }
  0x2c   :  { %1292 = vmatpush3.bf16.msra.mxu0 %v1390_v54 }
  0x2d   :  { %1314 = vmatpush3.bf16.msra.mxu1 %v1391_v55  ;;  %1293 = vmatprep.subr.bf16.mxu0 %v1392_v56 }
  0x2e   :  { %1315 = vmatprep.subr.bf16.mxu1 %v1393_v57 }
  0x30   :  { %1294 = vmatpush3.bf16.msra.mxu0 %v1394_v58 }
  0x31   :  { %1316 = vmatpush3.bf16.msra.mxu1 %v1395_v59  ;;  %1295 = vmatprep.subr.bf16.mxu0 %v1396_v60 }
  0x32   :  { %1317 = vmatprep.subr.bf16.mxu1 %v1397_v61 }
  0x34   :  { %1296 = vmatpush3.bf16.msra.mxu0 %v1398_v62 }
  0x35   :  { %1318 = vmatpush3.bf16.msra.mxu1 %v1399_v63  ;;  %1297 = vmatprep.subr.bf16.mxu0 %v1400_v0 }
  0x36   :  { %1319 = vmatprep.subr.bf16.mxu1 %v1401_v1 }
  0x38   :  { %1298 = vmatpush3.bf16.msra.mxu0 %v1402_v2 }
  0x39   :  { %1320 = vmatpush3.bf16.msra.mxu1 %v1403_v3  ;;  %1299 = vmatprep.subr.bf16.mxu0 %v1404_v4 }
  0x3a   :  { %1321 = vmatprep.subr.bf16.mxu1 %v1405_v5 }
  0x3c   :  { %1300 = vmatpush3.bf16.msra.mxu0 %v1406_v6 }
  0x3d   :  { %1322 = vmatpush3.bf16.msra.mxu1 %v1407_v7  ;;  %1301 = vmatprep.subr.bf16.mxu0 %v1408_v8 }
  0x3e   :  { %1323 = vmatprep.subr.bf16.mxu1 %v1409_v9 }
  0x40   :  { %1302 = vmatpush3.bf16.msra.mxu0 %v1410_v10 }
  0x41   :  { %1324 = vmatpush3.bf16.msra.mxu1 %v1411_v11 }
  0x42   :  { %12 = vsyncpa [#allocation3], 0  ;;  %v1412_v24 = vld [vmem:[%s1796_s3 + $0x8] sm:$0xff]   ;;  %v1436_v25 = vmov 0.0   ;;  %v1413_v26 = vld [vmem:[%s1796_s3] sm:$0xff]   ;;  %vm1437_vm0 = vmmov 0  }
  0x43   :  { %686 = vmatmul.mubr.bf16.vlgmr.msra.gmra.mxu0 %v48_v21  ;;  %1334 = vmatprep.subr.bf16.mxu0 %v1436_v25  ;;  %v1154_v34 = vld [vmem:[%s1795_s2] ss:$0 sm:$0xff]  ;;  %vm761_vm1 = vcmask 261120   ;;  %v818_v1 = vld [vmem:[%s1798_s5 + $0x48] sm:$0xff]  ;;  %v819_v15 = vld [vmem:[%s1798_s5 + $0x50] sm:$0xff]  ;;  %v1438_v18 = vmov 0  }
  0x44   :  { %727 = vmatmul.mubr.bf16.vlgmr.msra.gmra.mxu1 %v50_v23  ;;  %1335 = vmatpush3.bf16.msra.mxu0 %v1412_v24  ;;  %v817_v63 = vld [vmem:[%s1798_s5 + $0x40] sm:$0xff]  ;;  %v822_v3 = vld [vmem:[%s1798_s5 + $0x68] sm:$0xff]  ;;  %v823_v16 = vld [vmem:[%s1798_s5 + $0x70] sm:$0xff] }
  0x45   :  { %1336 = vmatprep.subr.bf16.mxu0 %v1436_v25  ;;  %1338 = vmatprep.mubr.msk.bf16.mxu0 %vm1437_vm0, %v1436_v25  ;;  %v821_v0 = vld [vmem:[%s1798_s5 + $0x60] sm:$0xff]  ;;  %v1233_v5 = vcombine.low %v818_v1, %v822_v3  ;;  %v1234_v6 = vcombine.high %v818_v1, %v822_v3  ;;  %v810_v9 = vld [vmem:[%s1798_s5 + $0x8] sm:$0xff]  ;;  %v820_v17 = vld [vmem:[%s1798_s5 + $0x58] sm:$0xff]  ;;  %v1235_v19 = vcombine.low %v819_v15, %v823_v16 }
  0x46   :  { %v1232_v2 = vcombine.high %v817_v63, %v821_v0  ;;  %v1231_v4 = vcombine.low %v817_v63, %v821_v0  ;;  %v809_v7 = vld [vmem:[%s1798_s5] sm:$0xff]  ;;  %v814_v11 = vld [vmem:[%s1798_s5 + $0x28] sm:$0xff]  ;;  %982 = vmatprep.mubr.bf16.mxu1 %v1438_v18  ;;  %v1236_v20 = vcombine.high %v819_v15, %v823_v16  ;;  %v824_v21 = vld [vmem:[%s1798_s5 + $0x78] sm:$0xff] }
  0x47   :  { %v813_v8 = vld [vmem:[%s1798_s5 + $0x20] sm:$0xff]  ;;  %v1225_v13 = vcombine.low %v810_v9, %v814_v11  ;;  %v1226_v14 = vcombine.high %v810_v9, %v814_v11  ;;  %v1237_v22 = vcombine.low %v820_v17, %v824_v21  ;;  %v1238_v23 = vcombine.high %v820_v17, %v824_v21 }
  0x48   :  { %1337 = vmatpush3.bf16.msra.mxu0 %v1413_v26  ;;  %962 = vmatprep.subr.bf16.mxu1 %v1232_v2  ;;  %v1224_v10 = vcombine.high %v809_v7, %v813_v8  ;;  %v1223_v12 = vcombine.low %v809_v7, %v813_v8  ;;  %v1219_v24 = vld [vmem:[%s1797_s4] ss:$0 sm:$0xff] }
  0x49   :  { %1005 = vmatprep.subr.bf16.mxu0 %v1234_v6  ;;  %963 = vmatpush1.bf16.msra.mxu1 %v1231_v4 }
  0x4a   :  { %964 = vmatprep.subr.bf16.mxu1 %v1224_v10 }
  0x4d   :  { %965 = vmatpush1.bf16.msra.mxu1 %v1223_v12 }
  0x4e   :  { %1048 = vmatprep.subr.bf16.mxu1 %v1236_v20 }
  0xe3   :  { %v1259_v27 = vpop.f32.mrf.mxu0 }
  0xe4   :  { %v1281_v28 = vpop.f32.mrf.mxu1 }
  0xe5   :  { %v1260_v29 = vpop.f32.mrf.mxu0 }
  0xe6   :  { %v1282_v30 = vpop.f32.mrf.mxu1  ;;  %v1261_v32 = vadd.f32 %v1260_v29, %v1259_v27 }
  0xe7   :  { %v1262_v31 = vpop.f32.mrf.mxu0  ;;  %v1283_v37 = vadd.f32 %v1282_v30, %v1281_v28  ;;  %v811_v30 = vld [vmem:[%s1798_s5 + $0x10] sm:$0xff] }
  0xe8   :  { %v1284_v33 = vpop.f32.mrf.mxu1  ;;  %v606_v36 = vadd.f32 %v1261_v32, %v1154_v34  ;;  %v815_v32 = vld [vmem:[%s1798_s5 + $0x30] sm:$0xff] }
  0xe9   :  { %v1263_v35 = vpop.f32.mrf.mxu0 }
  0xea   :  { %v1264_v38 = vadd.f32 %v1263_v35, %v1262_v31  ;;  %v1285_v39 = vpop.f32.mrf.mxu1  ;;  %v647_v43 = vadd.f32 %v1283_v37, %v606_v36 }
  0xeb   :  { %v1286_v48 = vadd.f32 %v1285_v39, %v1284_v33  ;;  %v812_v33 = vld [vmem:[%s1798_s5 + $0x18] sm:$0xff] }
  0xec   :  { %v609_v44 = vadd.f32 %v1264_v38, %v1154_v34  ;;  %v816_v34 = vld [vmem:[%s1798_s5 + $0x38] sm:$0xff]  ;;  %v1228_v38 = vcombine.high %v811_v30, %v815_v32 }
  0xed   :  { %v1230_v39 = vcombine.high %v812_v33, %v816_v34 }
  0xee   :  { %v650_v52 = vadd.f32 %v1286_v48, %v609_v44 }
 0x103   :  { %v1303_v40 = vpop.f32.mrf.mxu0 }
 0x104   :  { %v1325_v41 = vpop.f32.mrf.mxu1 }
 0x105   :  { %v1304_v42 = vpop.f32.mrf.mxu0 }
 0x106   :  { %v1305_v45 = vadd.f32 %v1304_v42, %v1303_v40  ;;  %v1326_v46 = vpop.f32.mrf.mxu1  ;;  %v1227_v40 = vcombine.low %v811_v30, %v815_v32  ;;  %v827_v42 = vlaneseq }
 0x107   :  { %v1306_v47 = vpop.f32.mrf.mxu0  ;;  %v1327_v53 = vadd.f32 %v1326_v46, %v1325_v41  ;;  %v1229_v41 = vcombine.low %v812_v33, %v816_v34  ;;  %v825_v46 = vld [vmem:[%s1799_s6] sm:$0xff]  ;;  %s1439_s6 = smov [#allocation2]  }
 0x108   :  { %v688_v49 = vadd.f32 %v1305_v45, %v647_v43  ;;  %v1328_v50 = vpop.f32.mrf.mxu1  ;;  %v828_v43 = vshrl.u32 %v827_v42, 7  ;;  %s1143_s9 = sshll.u32 %s1439_s6, 4  ;;  %s1144_s9 = int_to_ptr.vmem [resolvable:$true] %s1143_s9 }
 0x109   :  { %v1307_v51 = vpop.f32.mrf.mxu0  ;;  %s1414_s10 = scalar_lea.vmem %s1144_s9, 2048  ;;  %p1419_p1 = scmp.lt.s32.totalorder %s1144_s9, %s1144_s9 }
 0x10a   :  { %v1308_v54 = vadd.f32 %v1307_v51, %v1306_v47  ;;  %v1329_v55 = vpop.f32.mrf.mxu1  ;;  %v729_v56 = vadd.f32 %v1327_v53, %v688_v49  ;;  %v829_v44 = vsub.s32 0, %v828_v43  ;;  %v837_v45 = vsub.s32 2, %v828_v43  ;;  %p1415_p0 = scmp.ne.s32.totalorder %s1144_s9, %s1414_s10  ;;  %p1420_p2 = scmp.lt.s32.totalorder %s1414_s10, %s1414_s10 }
 0x10b   :  { %v1330_v58 = vadd.f32 %v1329_v55, %v1328_v50  ;;  %v833_v47 = vsub.s32 1, %v828_v43  ;;  %v841_v48 = vsub.s32 3, %v828_v43  ;;  %v849_v63 = vsub.s32 5, %v828_v43 }
 0x10c   :  { %v691_v57 = vadd.f32 %v1308_v54, %v650_v52  ;;  %v735_v60 = vmax.f32 %v729_v56, 0.0  ;;  %v830_v49 = vrot.slane %v825_v46, %v829_v44  ;;  %v838_v50 = vrot.slane %v825_v46, %v837_v45  ;;  %p1421_p3 = por %p1420_p2, %p1419_p1 }
 0x10d   :  { %v834_v51 = vrot.slane %v825_v46, %v833_v47  ;;  %v842_v52 = vrot.slane %v825_v46, %v841_v48  ;;  %v857_v0 = vsub.s32 7, %v828_v43  ;;  %v850_v11 = vrot.slane %v825_v46, %v849_v63 }
 0x10e   :  { %v732_v59 = vadd.f32 %v1330_v58, %v691_v57  ;;  %v845_v57 = vsub.s32 4, %v828_v43  ;;  %v853_v58 = vsub.s32 6, %v828_v43  ;;  %p1422_p4 = pnand %p1421_p3, %p1415_p0 }
 0x10f   :  { %v858_v12 = vrot.slane %v825_v46, %v857_v0 }
 0x110   :  { %v736_v61 = vmax.f32 %v732_v59, 0.0  ;;  %v854_v6 = vrot.slane %v825_v46, %v853_v58 }
 0x112   :  { %v737_v62 = vpack.c.bf16 %v736_v61, %v735_v60 }
 0x114   :  { %1339 = vmatmul.mubr.msk.bf16.vlgmr.msra.gmra.mxu0 %vm761_vm1, %v737_v62 }
 0x115   :  { %1006 = vmatpush1.bf16.msra.mxu0 %v1233_v5  ;;  %1025 = vmatprep.mubr.bf16.mxu0 %v1438_v18  ;;  %v846_v5 = vrot.slane %v825_v46, %v845_v57 }
 0x116   :  { %1007 = vmatprep.subr.bf16.mxu0 %v1226_v14 }
 0x119   :  { %1008 = vmatpush1.bf16.msra.mxu0 %v1225_v13 }
 0x11a   :  { %1091 = vmatprep.subr.bf16.mxu0 %v1238_v23 }
 0x1d4   :  { %v799_v25 = vpop.f32.mrf.mxu0 }
 0x1d5   :  { %v800_v27 = vadd.f32 %v1219_v24, %v799_v25 }
 0x1d6   :  { %v1340_v26 = vpop.f32.mrf.mxu0 }
 0x1d7   :  { %v806_v35 = vmax.f32 %v800_v27, 0.0 }
 0x1d8   :  { %v802_v28 = vpop.f32.mrf.mxu0 }
 0x1d9   :  { %v803_v29 = vadd.f32 %v1219_v24, %v802_v28 }
 0x1da   :  { %v1341_v31 = vpop.f32.mrf.mxu0 }
 0x1db   :  { %v807_v36 = vmax.f32 %v803_v29, 0.0 }
 0x1dd   :  { %v808_v37 = vpack.c.bf16 %v807_v36, %v806_v35 }
 0x1df   :  { %1239 = vmatmul.mubr.msk.bf16.vlgmr.msra.gmra.mxu1 %vm761_vm1, %v808_v37  ;;  %1240 = vmatmul.mubr.msk.bf16.vlgmr.msra.gmra.mxu0 %vm761_vm1, %v808_v37 }
 0x1e0   :  { %1049 = vmatpush1.bf16.msra.mxu1 %v1235_v19  ;;  %1092 = vmatpush1.bf16.msra.mxu0 %v1237_v22 }
 0x1e1   :  { %1050 = vmatprep.subr.bf16.mxu1 %v1228_v38  ;;  %1093 = vmatprep.subr.bf16.mxu0 %v1230_v39 }
 0x1e2   :  { %1068 = vmatprep.mubr.bf16.mxu1 %v1438_v18  ;;  %1111 = vmatprep.mubr.bf16.mxu0 %v1438_v18 }
 0x1e4   :  { %1051 = vmatpush1.bf16.msra.mxu1 %v1227_v40  ;;  %1094 = vmatpush1.bf16.msra.mxu0 %v1229_v41 }
 0x1e7   :  { %1241 = vmatmul.mubr.msk.bf16.vlgmr.msra.gmra.mxu1 %vm761_vm1, %v808_v37  ;;  %1242 = vmatmul.mubr.msk.bf16.vlgmr.msra.gmra.mxu0 %vm761_vm1, %v808_v37 }
 0x29f   :  { %v984_v53 = vpop.f32.mrf.mxu1  ;;  %v1027_v54 = vpop.f32.mrf.mxu0 }
 0x2a0   :  { %v985_v55 = vadd.f32 %v984_v53, %v830_v49  ;;  %v1028_v56 = vadd.f32 %v1027_v54, %v838_v50 }
 0x2a1   :  { %v986_v59 = vpop.f32.mrf.mxu1  ;;  %v1029_v60 = vpop.f32.mrf.mxu0 }
 0x2a2   :  { %1122 = vst [vmem:[#allocation2] sm:$0xff] %v985_v55  ;;  %1124 = vst [vmem:[#allocation2 + $0x10] sm:$0xff] %v1028_v56  ;;  %v987_v61 = vadd.f32 %v986_v59, %v834_v51  ;;  %v1030_v62 = vadd.f32 %v1029_v60, %v842_v52 }
 0x2a3   :  { %v988_v1 = vpop.f32.mrf.mxu1  ;;  %v1031_v2 = vpop.f32.mrf.mxu0 }
 0x2a4   :  { %1123 = vst [vmem:[#allocation2 + $0x8] sm:$0xff] %v987_v61  ;;  %1125 = vst [vmem:[#allocation2 + $0x18] sm:$0xff] %v1030_v62  ;;  %v989_v3 = vadd.f32 %v988_v1, %v830_v49  ;;  %v1032_v4 = vadd.f32 %v1031_v2, %v838_v50 }
 0x2a5   :  { %v990_v7 = vpop.f32.mrf.mxu1  ;;  %v1033_v8 = vpop.f32.mrf.mxu0 }
 0x2a6   :  { %1130 = vst [vmem:[#allocation2 + $0x40] sm:$0xff] %v989_v3  ;;  %1132 = vst [vmem:[#allocation2 + $0x50] sm:$0xff] %v1032_v4  ;;  %v991_v9 = vadd.f32 %v990_v7, %v834_v51  ;;  %v1034_v10 = vadd.f32 %v1033_v8, %v842_v52 }
 0x2a7   :  { %v1070_v13 = vpop.f32.mrf.mxu1  ;;  %v1113_v14 = vpop.f32.mrf.mxu0 }
 0x2a8   :  { %1131 = vst [vmem:[#allocation2 + $0x48] sm:$0xff] %v991_v9  ;;  %1133 = vst [vmem:[#allocation2 + $0x58] sm:$0xff] %v1034_v10  ;;  %v1071_v15 = vadd.f32 %v1070_v13, %v846_v5  ;;  %v1114_v16 = vadd.f32 %v1113_v14, %v854_v6 }
 0x2a9   :  { %v1072_v17 = vpop.f32.mrf.mxu1  ;;  %v1115_v18 = vpop.f32.mrf.mxu0 }
 0x2aa   :  { %1126 = vst [vmem:[#allocation2 + $0x20] sm:$0xff] %v1071_v15  ;;  %1128 = vst [vmem:[#allocation2 + $0x30] sm:$0xff] %v1114_v16  ;;  %v1073_v19 = vadd.f32 %v1072_v17, %v850_v11  ;;  %v1116_v20 = vadd.f32 %v1115_v18, %v858_v12 }
 0x2ab   :  { %v1074_v21 = vpop.f32.mrf.mxu1  ;;  %v1117_v22 = vpop.f32.mrf.mxu0 }
 0x2ac   :  { %1127 = vst [vmem:[#allocation2 + $0x28] sm:$0xff] %v1073_v19  ;;  %1129 = vst [vmem:[#allocation2 + $0x38] sm:$0xff] %v1116_v20  ;;  %v1075_v23 = vadd.f32 %v1074_v21, %v846_v5  ;;  %v1118_v24 = vadd.f32 %v1117_v22, %v854_v6 }
 0x2ad   :  { %v1076_v25 = vpop.f32.mrf.mxu1  ;;  %v1119_v26 = vpop.f32.mrf.mxu0 }
 0x2ae   :  { %1134 = vst [vmem:[#allocation2 + $0x60] sm:$0xff] %v1075_v23  ;;  %1136 = vst [vmem:[#allocation2 + $0x70] sm:$0xff] %v1118_v24  ;;  %v1077_v27 = vadd.f32 %v1076_v25, %v850_v11  ;;  %v1120_v28 = vadd.f32 %v1119_v26, %v858_v12 }
 0x2b0   :  { %1135 = vst [vmem:[#allocation2 + $0x68] sm:$0xff] %v1077_v27  ;;  %1137 = vst [vmem:[#allocation2 + $0x78] sm:$0xff] %v1120_v28 }
 0x2b1   :  { %1425 = shalt.err (!%p1422_p4)
}
 0x2b2   :  { %s1440_s11 = smov 1024   ;;  %s1441_s12 = smov 64  }
 0x2b3   :  { %1149 = dma.vmem_to_hbm [thread:$0]  %s1144_s9, 2048, %s1800_s7, [#allocation3], %s1440_s11, %s1440_s11, %s1441_s12  }
 0x2b4   :  { %1434 = dma.done.wait [#allocation3], 2048  }
 0x2b5   :  { %1435 = vsyncadd [#allocation3], 4294965248 }
 0x2b6   :  { %1153 = vsyncpa [#allocation3], 1 }

</bundles_post_ra>
